<compile_context>
chip_gen: v7x
topology: tpu7x:2x2x1
jax: 0.10.0
libtpu: 0.0.40
codegen_flags: <defaults>
</compile_context>

<pallas_src>
import jax
import jax.numpy as jnp
from jax.experimental import pallas as pl
from jax.experimental.pallas import tpu as pltpu

HIDDEN = 32
TN_MAX = 512          # lane tile along the (padded) batch axis; multiple of 128
SLAB_ROWS = 96        # packed parameter slab: (96, 128) f32 = 48 KB, one DMA


def mlp_kernel(x_ref, p_ref, o_ref):
    # x_ref: (1, TN) batch tile, batch on lanes.
    x = x_ref[...]

    # Single packed parameter slab; static, sublane-aligned slices (rows are
    # multiples of 8; w2/w3 start at lane 0).
    w2 = p_ref[0:32, 0:32]                      # (32, 32)
    w3 = p_ref[32:64, 0:32]                     # (32, 32)
    vecs = p_ref[64:96, :]                      # (32, 128) -> 4 unmasked vregs
    w1 = vecs[:, 0:1]                           # (32, 1)
    b1 = vecs[:, 1:2]
    b2 = vecs[:, 2:3]
    b3 = vecs[:, 3:4]
    w4t = vecs[:, 4:5]                          # (32, 1)  == w4.T
    b4 = vecs[0:1, 5:6]                         # (1, 1)

    # Layer 1 (K=1): degenerate matmul -> VPU broadcasted outer product + EUP tanh.
    h = jnp.tanh(w1 * x + b1)                                           # (32, TN)

    # Layers 2/3: lane-dense (32,32) x (32,TN) MXU matmuls, f32 accumulation.
    h = jnp.tanh(jnp.dot(w2, h, preferred_element_type=jnp.float32) + b2)
    h = jnp.tanh(jnp.dot(w3, h, preferred_element_type=jnp.float32) + b3)

    # Layer 4 (N_out=1): VPU multiply + sublane (XLU) reduction instead of MXU.
    out = jnp.sum(w4t * h, axis=0, keepdims=True) + b4                  # (1, TN)

    # NOTE: padded lanes n..n_pad carry tanh-of-bias values (not zeros); they are
    # sliced off by the wrapper — never reduce over the raw (1, n_pad) output.
    o_ref[...] = out.astype(o_ref.dtype)


def pack_params(params):
    """Pack all weights/biases (torch layout) into one (96, 128) f32 slab."""
    slab = jnp.zeros((SLAB_ROWS, 128), jnp.float32)
    slab = slab.at[0:32, 0:32].set(params["w2"].astype(jnp.float32))
    slab = slab.at[32:64, 0:32].set(params["w3"].astype(jnp.float32))
    slab = slab.at[64:96, 0].set(params["w1"][:, 0].astype(jnp.float32))
    slab = slab.at[64:96, 1].set(params["b1"].astype(jnp.float32))
    slab = slab.at[64:96, 2].set(params["b2"].astype(jnp.float32))
    slab = slab.at[64:96, 3].set(params["b3"].astype(jnp.float32))
    slab = slab.at[64:96, 4].set(params["w4"][0, :].astype(jnp.float32))  # w4.T column
    slab = slab.at[64, 5].set(params["b4"][0].astype(jnp.float32))
    return slab


def _mlp_pallas(x_lanes, slab, tn):
    n_pad = x_lanes.shape[1]
    cost = pl.CostEstimate(
        flops=2 * n_pad * (HIDDEN + 2 * HIDDEN * HIDDEN + HIDDEN),
        transcendentals=3 * HIDDEN * n_pad,
        bytes_accessed=2 * 4 * n_pad + SLAB_ROWS * 128 * 4,
    )
    return pl.pallas_call(
        mlp_kernel,
        out_shape=jax.ShapeDtypeStruct((1, n_pad), x_lanes.dtype),
        grid=(n_pad // tn,),
        in_specs=[
            pl.BlockSpec((1, tn), lambda i: (0, i)),            # x tile (lane-dense)
            pl.BlockSpec((SLAB_ROWS, 128), lambda i: (0, 0)),   # params: 1 const DMA
        ],
        out_specs=pl.BlockSpec((1, tn), lambda i: (0, i)),
        compiler_params=pltpu.CompilerParams(
            dimension_semantics=("parallel",),            # v7x megacore shards steps
            allow_input_fusion=[True, False],             # fuse wrapper layout op in
        ),
        cost_estimate=cost,
    )(x_lanes, slab)


def _choose_tile(n_pad):
    # Largest 128-multiple tile <= TN_MAX dividing n_pad, preferring >= 2 grid
    # steps so both v7x TensorCores are used; TN_MAX=512 keeps (32,TN) f32
    # activations inside the 64-entry vreg file (no spills).
    candidates = [t for t in range(128, TN_MAX + 1, 128) if n_pad % t == 0]
    multi = [t for t in candidates if n_pad // t >= 2]
    return max(multi) if multi else max(candidates)


@jax.jit
def mlp_forward_lanes(x_lanes, slab):
    """Lane-major entry point: x_lanes is (1, n_pad), n_pad % 128 == 0.

    Use this end-to-end in a PINN training loop to avoid per-call layout ops.
    """
    n_pad = x_lanes.shape[1]
    assert n_pad % 128 == 0, "lane-major batch must be padded to a multiple of 128"
    tn = _choose_tile(n_pad)
    return _mlp_pallas(x_lanes, slab, tn)


@jax.jit
def mlp_forward(x, slab):
    """Module-parity API: x is (N, 1) float32, returns (N, 1)."""
    n = x.shape[0]
    n_pad = pl.cdiv(n, 128) * 128
    # batch-on-lanes, zero padded (padded lanes are sliced off below).
    x_lanes = jnp.zeros((1, n_pad), x.dtype).at[0, :n].set(x[:, 0])
    out = mlp_forward_lanes(x_lanes, slab)
    return out[0, :n].reshape(n, 1)


def init_params(key):
    """torch.nn.Linear-style init (U[-1/sqrt(fan_in), +]) in torch (out, in) layout."""
    sizes = [(1, HIDDEN), (HIDDEN, HIDDEN), (HIDDEN, HIDDEN), (HIDDEN, 1)]
    params = {}
    keys = jax.random.split(key, 2 * len(sizes))
    for idx, (fan_in, fan_out) in enumerate(sizes):
        bound = 1.0 / float(fan_in) ** 0.5
        w = jax.random.uniform(keys[2 * idx], (fan_out, fan_in),
                               minval=-bound, maxval=bound, dtype=jnp.float32)
        b = jax.random.uniform(keys[2 * idx + 1], (fan_out,),
                               minval=-bound, maxval=bound, dtype=jnp.float32)
        params[f"w{idx + 1}"] = w
        params[f"b{idx + 1}"] = b
    # scalar physics parameters of the PINN (unused in forward, kept for parity)
    params["k"] = jnp.float32(0.1)
    params["f"] = jnp.float32(0.1)
    return params


def mlp_ref(x, params):
    h = jnp.tanh(x @ params["w1"].T + params["b1"])
    h = jnp.tanh(h @ params["w2"].T + params["b2"])
    h = jnp.tanh(h @ params["w3"].T + params["b3"])
    return h @ params["w4"].T + params["b4"]


if __name__ == "__main__":
    key = jax.random.PRNGKey(0)
    k_param, k_x = jax.random.split(key)
    params = init_params(k_param)
    slab = pack_params(params)          # pack once; reuse across all forward calls

    n = 100  # matches `x = torch.rand(n, 1)` in the module's script
    x = jax.random.uniform(k_x, (n, 1), dtype=jnp.float32)

    out = mlp_forward(x, slab)
    out = jax.block_until_ready(out)

    ref = mlp_ref(x, params)
    assert out.shape == (n, 1), out.shape
    assert jnp.allclose(out, ref, atol=3e-5, rtol=1e-5), "mismatch vs reference"
    print("KERNEL_OK")
</pallas_src>

<mosaic_0001>
module attributes {stable_mosaic.version = 11 : i64} {
  func.func @mlp_kernel(%arg0: i32, %arg1: memref<1x128xf32, #tpu.memory_space<vmem>>, %arg2: memref<96x128xf32, #tpu.memory_space<vmem>>, %arg3: memref<1x128xf32, #tpu.memory_space<vmem>>) attributes {dimension_semantics = [#tpu.dimension_semantics<parallel>], iteration_bounds = array<i64: 1>, scalar_prefetch = 0 : i64, scratch_operands = 0 : i64, tpu.core_type = #tpu.core_type<tc>, window_params = [{transform_indices = @transform_0, window_bounds = array<i64: 1, 128>}, {pipeline_mode = #tpu.pipeline_mode<synchronous>, transform_indices = @transform_1, window_bounds = array<i64: 96, 128>}, {transform_indices = @transform_2, window_bounds = array<i64: 1, 128>}]} {
    %c0 = arith.constant 0 : index
    %c0_0 = arith.constant 0 : index
    %0 = vector.load %arg1[%c0, %c0_0] : memref<1x128xf32, #tpu.memory_space<vmem>>, vector<1x128xf32>
    %c0_1 = arith.constant 0 : index
    %c0_2 = arith.constant 0 : index
    %1 = vector.load %arg2[%c0_1, %c0_2] : memref<96x128xf32, #tpu.memory_space<vmem>>, vector<32x32xf32>
    %c32 = arith.constant 32 : index
    %c0_3 = arith.constant 0 : index
    %2 = vector.load %arg2[%c32, %c0_3] : memref<96x128xf32, #tpu.memory_space<vmem>>, vector<32x32xf32>
    %c64 = arith.constant 64 : index
    %c0_4 = arith.constant 0 : index
    %3 = vector.load %arg2[%c64, %c0_4] : memref<96x128xf32, #tpu.memory_space<vmem>>, vector<32x128xf32>
    %4 = vector.extract_strided_slice %3 {offsets = [0, 0], sizes = [32, 1], strides = [1, 1]} : vector<32x128xf32> to vector<32x1xf32>
    %5 = vector.extract_strided_slice %3 {offsets = [0, 1], sizes = [32, 1], strides = [1, 1]} : vector<32x128xf32> to vector<32x1xf32>
    %6 = vector.extract_strided_slice %3 {offsets = [0, 2], sizes = [32, 1], strides = [1, 1]} : vector<32x128xf32> to vector<32x1xf32>
    %7 = vector.extract_strided_slice %3 {offsets = [0, 3], sizes = [32, 1], strides = [1, 1]} : vector<32x128xf32> to vector<32x1xf32>
    %8 = vector.extract_strided_slice %3 {offsets = [0, 4], sizes = [32, 1], strides = [1, 1]} : vector<32x128xf32> to vector<32x1xf32>
    %9 = vector.extract_strided_slice %3 {offsets = [0, 5], sizes = [1, 1], strides = [1, 1]} : vector<32x128xf32> to vector<1x1xf32>
    %10 = vector.broadcast %4 : vector<32x1xf32> to vector<32x128xf32>
    %11 = vector.broadcast %0 : vector<1x128xf32> to vector<32x128xf32>
    %12 = arith.mulf %10, %11 : vector<32x128xf32>
    %13 = vector.broadcast %5 : vector<32x1xf32> to vector<32x128xf32>
    %14 = arith.addf %12, %13 : vector<32x128xf32>
    %15 = math.tanh %14 : vector<32x128xf32>
    %cst = arith.constant dense<0.000000e+00> : vector<32x128xf32>
    %16 = tpu.matmul %1, %15, %cst {dimension_numbers = #tpu.dot_dimension_numbers<[1], [0], [0], [1], [0, 0, 1, 1], [], []>} : vector<32x32xf32>, vector<32x128xf32>, vector<32x128xf32> -> vector<32x128xf32>
    %17 = vector.broadcast %6 : vector<32x1xf32> to vector<32x128xf32>
    %18 = arith.addf %16, %17 : vector<32x128xf32>
    %19 = math.tanh %18 : vector<32x128xf32>
    %cst_5 = arith.constant dense<0.000000e+00> : vector<32x128xf32>
    %20 = tpu.matmul %2, %19, %cst_5 {dimension_numbers = #tpu.dot_dimension_numbers<[1], [0], [0], [1], [0, 0, 1, 1], [], []>} : vector<32x32xf32>, vector<32x128xf32>, vector<32x128xf32> -> vector<32x128xf32>
    %21 = vector.broadcast %7 : vector<32x1xf32> to vector<32x128xf32>
    %22 = arith.addf %20, %21 : vector<32x128xf32>
    %23 = math.tanh %22 : vector<32x128xf32>
    %24 = vector.broadcast %8 : vector<32x1xf32> to vector<32x128xf32>
    %25 = arith.mulf %24, %23 : vector<32x128xf32>
    %cst_6 = arith.constant dense<0.000000e+00> : vector<128xf32>
    %26 = vector.multi_reduction <add>, %25, %cst_6 [0] : vector<32x128xf32> to vector<128xf32>
    %27 = vector.shape_cast %26 : vector<128xf32> to vector<1x128xf32>
    %28 = vector.broadcast %9 : vector<1x1xf32> to vector<1x128xf32>
    %29 = arith.addf %27, %28 : vector<1x128xf32>
    %c0_7 = arith.constant 0 : index
    %c0_8 = arith.constant 0 : index
    %30 = vector.load %arg3[%c0_7, %c0_8] : memref<1x128xf32, #tpu.memory_space<vmem>>, vector<1x128xf32>
    tpu.vector_store %arg3[%c0_7, %c0_8], %29 {strides = array<i32>} : memref<1x128xf32, #tpu.memory_space<vmem>>, vector<1x128xf32>,
    return
  }
  func.func @transform_0(%arg0: i32) -> (i32, i32) {
    %c0_i32 = arith.constant 0 : i32
    %c0_i32_0 = arith.constant 0 : i32
    return %c0_i32, %arg0 : i32, i32
  }
  func.func @transform_1(%arg0: i32) -> (i32, i32) {
    %c0_i32 = arith.constant 0 : i32
    %c0_i32_0 = arith.constant 0 : i32
    %c0_i32_1 = arith.constant 0 : i32
    return %c0_i32, %c0_i32_0 : i32, i32
  }
  func.func @transform_2(%arg0: i32) -> (i32, i32) {
    %c0_i32 = arith.constant 0 : i32
    %c0_i32_0 = arith.constant 0 : i32
    return %c0_i32, %arg0 : i32, i32
  }
}

</mosaic_0001>

<bundles_post_ra>
// kernel: mlp_forward_lanes.1
= control target key start
LH: loop header
LB: loop body
LE: loop exit
PB: predicated region body
PF: predicated region fallthrough
CT: control target
= control target key end

     0   :  { %7 = vsyncpa [#allocation3], 0  ;;  %s685_s0 = inlined_call_operand.hbm [shape: f32[1,128], index: 0, kind: input, shape index: {}]   ;;  %s686_s1 = inlined_call_operand.hbm [shape: f32[96,128], index: 1, kind: input, shape index: {}]   ;;  %s687_s2 = inlined_call_operand.hbm [shape: f32[1,128], index: 2, kind: output, shape index: {}]  }
   0x1   :  { %8 = vsyncpa [#allocation6], 0 }
   0x2   :  { %9 = vsyncpa [#allocation4], 0  ;;  %s579_s9 = smov [#allocation2]   ;;  %s580_s11 = smov [#allocation5]  }
   0x3   :  { %s16_s10 = sshll.u32 %s579_s9, 4  ;;  %s25_s12 = sshll.u32 %s580_s11, 4  ;;  %s17_s10 = int_to_ptr.vmem [resolvable:$true] %s16_s10  ;;  %s605_s12 = int_to_ptr.vmem [resolvable:$true] %s25_s12 }
   0x4   :  { %s507_s15 = scalar_lea.hbm %s685_s0, 16 }
   0x5   :  { %p508_p0 = scmp.ne.s32.totalorder %s685_s0, %s507_s15  ;;  %p511_p1 = scmp.lt.u32.totalorder %s507_s15, %s685_s0 }
   0x7   :  { %p513_p2 = pnand %p511_p1, %p508_p0 }
   0x9   :  { %516 = shalt.err (!%p513_p2)
}
   0xa   :  { %s517_s20 = scalar_lea.vmem %s17_s10, 16  ;;  %s521_s21 = scalar_lea.vmem %s17_s10, 32 }
   0xb   :  { %p518_p3 = scmp.ne.s32.totalorder %s17_s10, %s517_s20  ;;  %p522_p4 = scmp.lt.s32.totalorder %s17_s10, %s17_s10 }
   0xc   :  { %p523_p5 = scmp.lt.s32.totalorder %s521_s21, %s517_s20 }
   0xe   :  { %p524_p6 = por %p523_p5, %p522_p4 }
  0x10   :  { %p525_p7 = pnand %p524_p6, %p518_p3 }
  0x12   :  { %528 = shalt.err (!%p525_p7)
}
  0x13   :  { %19 = dma.hbm_to_vmem [thread:$0]  %s685_s0, 16, %s17_s10, [#allocation3]  }
  0x14   :  { %s529_s26 = scalar_lea.hbm %s686_s1, 1536 }
  0x15   :  { %p530_p8 = scmp.ne.s32.totalorder %s686_s1, %s529_s26  ;;  %p533_p9 = scmp.lt.u32.totalorder %s529_s26, %s686_s1 }
  0x17   :  { %p535_p10 = pnand %p533_p9, %p530_p8 }
  0x19   :  { %538 = shalt.err (!%p535_p10)
}
  0x1a   :  { %s539_s3 = scalar_lea.vmem %s605_s12, 1536  ;;  %p544_p12 = scmp.lt.s32.totalorder %s605_s12, %s605_s12 }
  0x1b   :  { %p540_p11 = scmp.ne.s32.totalorder %s605_s12, %s539_s3  ;;  %p545_p13 = scmp.lt.s32.totalorder %s539_s3, %s539_s3 }
  0x1d   :  { %p546_p0 = por %p545_p13, %p544_p12 }
  0x1f   :  { %p547_p1 = pnand %p546_p0, %p540_p11 }
  0x21   :  { %550 = shalt.err (!%p547_p1)
}
  0x22   :  { %s581_s0 = smov 128   ;;  %s582_s4 = smov 8  }
  0x23   :  { %31 = dma.hbm_to_vmem [thread:$0]  %s686_s1, 1536, %s605_s12, [#allocation6], %s581_s0, %s581_s0, %s582_s4  }
  0x24   :  { %573 = dma.done.wait [#allocation3], 16  }
  0x25   :  { %574 = vsyncadd [#allocation3], 4294967280 }
  0x26   :  { %575 = dma.done.wait [#allocation6], 1536  }
  0x27   :  { %576 = vsyncadd [#allocation6], 4294965760  ;;  %v583_v0 = vmov 1   ;;  %v584_v1 = vmov 0   ;;  %v636_v2 = vld [vmem:[#allocation5 + $0x40] sm:$0xff]  ;;  %v640_v3 = vld [vmem:[#allocation5 + $0x48] sm:$0xff] }
  0x28   :  { %472 = vset.pattern.permute.xlu1 %v583_v0  ;;  %471 = vset.pattern.permute.xlu0 %v584_v1  ;;  %v644_v4 = vld [vmem:[#allocation5 + $0x50] sm:$0xff]  ;;  %v646_v5 = vld [vmem:[#allocation5 + $0x58] sm:$0xff]  ;;  %v39_v6 = vld [vmem:[#allocation5] sm:$0xff]  ;;  %vm121_vm0 = vcmask 261120   ;;  %v585_v7 = vmov 2   ;;  %v586_v35 = vmov 3  }
  0x29   :  { %82 = vperm.xlu1 %472, %v636_v2   ;;  %53 = vperm.xlu0 %471, %v636_v2   ;;  %v391_v8 = vld [vmem:[#allocation2] ss:$0 sm:$0xff]  ;;  %v40_v31 = vld [vmem:[#allocation5 + $0x8] sm:$0xff]  ;;  %v41_v32 = vld [vmem:[#allocation5 + $0x10] sm:$0xff]  ;;  %v587_v36 = vmov 4   ;;  %v588_v37 = vmov 5  }
  0x2a   :  { %424 = vmatprep.mubr.msk.f32.mxu0 %vm121_vm0, %v39_v6  ;;  %v42_v33 = vld [vmem:[#allocation5 + $0x18] sm:$0xff]  ;;  %v43_v34 = vld [vmem:[#allocation5 + $0x20] sm:$0xff]  ;;  %v44_v56 = vld [vmem:[#allocation5 + $0x28] sm:$0xff]  ;;  %s589_s1 = smov [#allocation7]  }
  0x2b   :  { %438 = vmatprep.mubr.msk.f32.mxu1 %vm121_vm0, %v43_v34  ;;  %v45_v57 = vld [vmem:[#allocation5 + $0x30] sm:$0xff]  ;;  %v46_v58 = vld [vmem:[#allocation5 + $0x38] sm:$0xff]  ;;  %s381_s7 = sshll.u32 %s589_s1, 4  ;;  %s382_s7 = int_to_ptr.vmem [resolvable:$true] %s381_s7 }
  0x2c   :  { %s551_s8 = scalar_lea.vmem %s382_s7, 16  ;;  %s555_s9 = scalar_lea.vmem %s382_s7, 32 }
  0x2d   :  { %86 = vperm.xlu1 %472, %v640_v3   ;;  %58 = vperm.xlu0 %471, %v640_v3   ;;  %p552_p2 = scmp.ne.s32.totalorder %s382_s7, %s551_s8  ;;  %p556_p3 = scmp.lt.s32.totalorder %s382_s7, %s382_s7 }
  0x2e   :  { %p557_p4 = scmp.lt.s32.totalorder %s555_s9, %s551_s8 }
  0x30   :  { %p558_p5 = por %p557_p4, %p556_p3 }
  0x31   :  { %473 = vset.pattern.permute.xlu1 %v584_v1  ;;  %63 = vperm.xlu0 %471, %v644_v4  }
  0x32   :  { %68 = vperm.xlu1 %473, %v646_v5   ;;  %p559_p6 = pnand %p558_p5, %p552_p2 }
  0x35   :  { %474 = vset.pattern.permute.xlu0 %v583_v0 }
  0x36   :  { %475 = vset.pattern.permute.xlu1 %v583_v0  ;;  %90 = vperm.xlu0 %474, %v644_v4  }
  0x37   :  { %94 = vperm.xlu1 %475, %v646_v5  }
  0x3a   :  { %477 = vset.pattern.permute.xlu0 %v585_v7 }
  0x3b   :  { %476 = vset.pattern.permute.xlu1 %v585_v7  ;;  %110 = vperm.xlu0 %477, %v640_v3  }
  0x3c   :  { %106 = vperm.xlu1 %476, %v636_v2  }
  0x3f   :  { %478 = vset.pattern.permute.xlu0 %v586_v35 }
  0x40   :  { %114 = vperm.xlu1 %476, %v644_v4   ;;  %224 = vperm.xlu0 %478, %v636_v2  }
  0x44   :  { %118 = vperm.xlu1 %476, %v646_v5   ;;  %236 = vperm.xlu0 %478, %v646_v5  }
  0x48   :  { %479 = vset.pattern.permute.xlu1 %v586_v35  ;;  %481 = vset.pattern.permute.xlu0 %v587_v36 }
  0x49   :  { %228 = vperm.xlu1 %479, %v640_v3   ;;  %345 = vperm.xlu0 %481, %v640_v3  }
  0x4d   :  { %232 = vperm.xlu1 %479, %v644_v4   ;;  %482 = vset.pattern.permute.xlu0 %v588_v37 }
  0x4e   :  { %370 = vperm.xlu0 %482, %v636_v2  }
  0x51   :  { %480 = vset.pattern.permute.xlu1 %v587_v36 }
  0x52   :  { %341 = vperm.xlu1 %480, %v636_v2  }
  0x56   :  { %349 = vperm.xlu1 %480, %v644_v4  }
  0x5a   :  { %353 = vperm.xlu1 %480, %v646_v5  }
  0xa8   :  { %v83_v9 = vpop.permute.xlu1 %82  ;;  %v54_v10 = vpop.permute.xlu0 %53 }
  0xa9   :  { %v77_v11 = vmul.f32 %v391_v8, %v54_v10 }
  0xab   :  { %v97_v12 = vadd.f32 %v83_v9, %v77_v11 }
  0xac   :  { %v87_v13 = vpop.permute.xlu1 %86  ;;  %v59_v14 = vpop.permute.xlu0 %58 }
  0xad   :  { %v78_v15 = vmul.f32 %v391_v8, %v59_v14  ;;  %483 = vtanh.f32 %v97_v12 }
  0xaf   :  { %v98_v16 = vadd.f32 %v87_v13, %v78_v15 }
  0xb0   :  { %v64_v17 = vpop.permute.xlu0 %63 }
  0xb1   :  { %485 = vtanh.f32 %v98_v16  ;;  %v69_v18 = vpop.permute.xlu1 %68  ;;  %v79_v19 = vmul.f32 %v391_v8, %v64_v17 }
  0xb2   :  { %v80_v20 = vmul.f32 %v391_v8, %v69_v18 }
  0xb5   :  { %v91_v21 = vpop.permute.xlu0 %90 }
  0xb6   :  { %v99_v22 = vadd.f32 %v91_v21, %v79_v19  ;;  %v95_v23 = vpop.permute.xlu1 %94 }
  0xb7   :  { %v100_v24 = vadd.f32 %v95_v23, %v80_v20  ;;  %v484_v25 = vpop.eup %483 }
  0xb8   :  { %487 = vtanh.f32 %v99_v22 }
  0xb9   :  { %489 = vtanh.f32 %v100_v24 }
  0xba   :  { %v111_v40 = vpop.permute.xlu0 %110 }
  0xbb   :  { %v486_v26 = vpop.eup %485  ;;  %v107_v38 = vpop.permute.xlu1 %106 }
  0xbc   :  { %v444_v27 = vpack.c.bf16 %v486_v26, %v484_v25 }
  0xbe   :  { %445 = vmatprep.subr.bf16.mxu0 %v444_v27 }
  0xbf   :  { %447 = vmatpush3.bf16.msra.mxu0 %v444_v27  ;;  %v115_v39 = vpop.permute.xlu1 %114  ;;  %v225_v60 = vpop.permute.xlu0 %224 }
  0xc2   :  { %v488_v28 = vpop.eup %487 }
  0xc3   :  { %v490_v29 = vpop.eup %489  ;;  %v119_v45 = vpop.permute.xlu1 %118 }
  0xc4   :  { %v448_v30 = vpack.c.bf16 %v490_v29, %v488_v28  ;;  %v237_v2 = vpop.permute.xlu0 %236 }
  0xc6   :  { %449 = vmatprep.subr.bf16.mxu0 %v448_v30 }
  0xc7   :  { %451 = vmatpush3.bf16.msra.mxu0 %v448_v30 }
  0xc8   :  { %v229_v59 = vpop.permute.xlu1 %228  ;;  %v346_v8 = vpop.permute.xlu0 %345 }
  0xca   :  { %425 = vmatmul.mubr.msk.f32.vlgmr.msra.gmra.mrb[0].mxu0 %vm121_vm0, %v40_v31 }
  0xcb   :  { %427 = vmatprep.mubr.msk.f32.mxu0 %vm121_vm0, %v41_v32 }
  0xcc   :  { %v233_v0 = vpop.permute.xlu1 %232 }
  0xcd   :  { %v371_v27 = vpop.permute.xlu0 %370 }
  0xce   :  { %428 = vmatmul.mubr.msk.f32.gmra.mrb[2].mxu0 %vm121_vm0, %v42_v33 }
  0xd1   :  { %v342_v7 = vpop.permute.xlu1 %341 }
  0xd5   :  { %v350_v11 = vpop.permute.xlu1 %349 }
  0xd9   :  { %v354_v18 = vpop.permute.xlu1 %353 }
 0x19d   :  { %v426_v41 = vpop.f32.mrb[0].mxu0 }
 0x19e   :  { %v206_v42 = vadd.f32 %v426_v41, %v111_v40  ;;  %v200_v43 = vpop.f32.mrb[1].mxu0 }
 0x19f   :  { %v201_v44 = vadd.f32 %v200_v43, %v107_v38 }
 0x1a0   :  { %491 = vtanh.f32 %v206_v42 }
 0x1a1   :  { %493 = vtanh.f32 %v201_v44  ;;  %v429_v46 = vpop.f32.mrb[2].mxu0 }
 0x1a2   :  { %v216_v47 = vadd.f32 %v429_v46, %v119_v45  ;;  %v210_v48 = vpop.f32.mrb[3].mxu0 }
 0x1a3   :  { %v211_v49 = vadd.f32 %v210_v48, %v115_v39 }
 0x1a4   :  { %495 = vtanh.f32 %v216_v47 }
 0x1a5   :  { %497 = vtanh.f32 %v211_v49 }
 0x1aa   :  { %v492_v50 = vpop.eup %491 }
 0x1ab   :  { %v494_v51 = vpop.eup %493 }
 0x1ac   :  { %v452_v52 = vpack.c.bf16 %v492_v50, %v494_v51 }
 0x1ae   :  { %v496_v53 = vpop.eup %495  ;;  %453 = vmatprep.subr.bf16.mxu1 %v452_v52 }
 0x1af   :  { %v498_v54 = vpop.eup %497  ;;  %455 = vmatpush3.bf16.msra.mxu1 %v452_v52 }
 0x1b0   :  { %v456_v55 = vpack.c.bf16 %v496_v53, %v498_v54 }
 0x1b2   :  { %457 = vmatprep.subr.bf16.mxu1 %v456_v55 }
 0x1b3   :  { %459 = vmatpush3.bf16.msra.mxu1 %v456_v55 }
 0x1b6   :  { %439 = vmatmul.mubr.msk.f32.vlgmr.msra.gmra.mrb[0].mxu1 %vm121_vm0, %v44_v56 }
 0x1b7   :  { %441 = vmatprep.mubr.msk.f32.mxu1 %vm121_vm0, %v45_v57 }
 0x1ba   :  { %442 = vmatmul.mubr.msk.f32.gmra.mrb[2].mxu1 %vm121_vm0, %v46_v58 }
 0x289   :  { %v440_v61 = vpop.f32.mrb[0].mxu1 }
 0x28a   :  { %v323_v62 = vadd.f32 %v440_v61, %v229_v59  ;;  %v317_v63 = vpop.f32.mrb[1].mxu1 }
 0x28b   :  { %v318_v1 = vadd.f32 %v317_v63, %v225_v60 }
 0x28c   :  { %499 = vtanh.f32 %v323_v62 }
 0x28d   :  { %501 = vtanh.f32 %v318_v1  ;;  %v443_v3 = vpop.f32.mrb[2].mxu1 }
 0x28e   :  { %v333_v4 = vadd.f32 %v443_v3, %v237_v2  ;;  %v327_v5 = vpop.f32.mrb[3].mxu1 }
 0x28f   :  { %v328_v6 = vadd.f32 %v327_v5, %v233_v0 }
 0x290   :  { %503 = vtanh.f32 %v333_v4 }
 0x291   :  { %505 = vtanh.f32 %v328_v6 }
 0x296   :  { %v500_v9 = vpop.eup %499 }
 0x297   :  { %v502_v10 = vpop.eup %501  ;;  %v357_v12 = vmul.f32 %v500_v9, %v346_v8 }
 0x298   :  { %v356_v13 = vmul.f32 %v502_v10, %v342_v7 }
 0x29a   :  { %v504_v14 = vpop.eup %503  ;;  %v360_v15 = vadd.f32 %v357_v12, %v356_v13 }
 0x29b   :  { %v506_v16 = vpop.eup %505  ;;  %v359_v19 = vmul.f32 %v504_v14, %v354_v18 }
 0x29c   :  { %v358_v17 = vmul.f32 %v506_v16, %v350_v11 }
 0x29e   :  { %v361_v20 = vadd.f32 %v360_v15, %v358_v17 }
 0x2a0   :  { %v362_v21 = vadd.f32 %v361_v20, %v359_v19 }
 0x2a2   :  { %v363_v22 = vrot.slane %v362_v21, 4 }
 0x2a4   :  { %v364_v23 = vadd.f32 %v363_v22, %v362_v21 }
 0x2a6   :  { %v365_v24 = vrot.slane %v364_v23, 2 }
 0x2a8   :  { %v366_v25 = vadd.f32 %v365_v24, %v364_v23 }
 0x2aa   :  { %v367_v26 = vrot.slane %v366_v25, 1 }
 0x2ac   :  { %v368_v28 = vadd.f32 %v367_v26, %v366_v25 }
 0x2ae   :  { %v373_v29 = vadd.f32 %v371_v27, %v368_v28 }
 0x2b0   :  { %374 = vst [vmem:[#allocation7] sm:$0x1] %v373_v29 }
 0x2b1   :  { %562 = shalt.err (!%p559_p6)
}
 0x2b2   :  { %s563_s12 = scalar_lea.hbm %s687_s2, 16 }
 0x2b3   :  { %p564_p7 = scmp.ne.s32.totalorder %s687_s2, %s563_s12  ;;  %p567_p8 = scmp.lt.u32.totalorder %s563_s12, %s687_s2 }
 0x2b5   :  { %p569_p9 = pnand %p567_p8, %p564_p7 }
 0x2b7   :  { %572 = shalt.err (!%p569_p9)
}
 0x2b8   :  { %384 = dma.vmem_to_hbm [thread:$0]  %s382_s7, 16, %s687_s2, [#allocation4]  }
 0x2b9   :  { %577 = dma.done.wait [#allocation4], 16  }
 0x2ba   :  { %578 = vsyncadd [#allocation4], 4294967280 }
 0x2bb   :  { %388 = vsyncpa [#allocation3], 1 }
 0x2bc   :  { %389 = vsyncpa [#allocation6], 1 }
 0x2bd   :  { %390 = vsyncpa [#allocation4], 1 }

</bundles_post_ra>
